<compile_context>
chip_gen: v7x
topology: tpu7x:2x2x1
jax: 0.10.0
libtpu: 0.0.40
codegen_flags: <defaults>
</compile_context>

<pallas_src>
import jax
import jax.numpy as jnp
from jax import lax
from jax.experimental import pallas as pl
from jax.experimental.pallas import tpu as pltpu
import numpy as np


# ---------------------------------------------------------------------------
# Kernel
# ---------------------------------------------------------------------------
def predator_mlp_kernel(x_ref, w1_ref, b1_ref, w2_ref, b2_ref, w3_ref, b3_ref, o_ref):
    """x_ref/o_ref: (4, TB) with batch on lanes.  Weights PyTorch-style (out, in),
    biases (out, 1) broadcast along lanes.  The lane axis is processed in
    128/256-lane chunks so h1/h2 never leave vregs."""
    tb = x_ref.shape[1]
    tc = 256 if tb % 256 == 0 else 128          # chunk width (multiple of 128)
    n_chunks = tb // tc

    # Weights/biases are tiny; load once and keep in vregs across the loop.
    w1 = w1_ref[...]; b1 = b1_ref[...]
    w2 = w2_ref[...]; b2 = b2_ref[...]
    w3 = w3_ref[...]; b3 = b3_ref[...]

    # Manual 2x unroll (two independent chunks per iteration) to give the
    # scheduler some ILP across the dependent 3-matmul chain.
    step = 2 if (n_chunks % 2 == 0 and n_chunks >= 2) else 1

    def do_chunk(off):
        off = pl.multiple_of(off, tc)
        xc = x_ref[:, pl.ds(off, tc)]                               # (4, tc)
        h1 = jnp.dot(w1, xc, preferred_element_type=jnp.float32) + b1
        h1 = jnp.maximum(h1, 0.0)                                   # (32, tc)
        h2 = jnp.dot(w2, h1, preferred_element_type=jnp.float32) + b2
        h2 = jnp.maximum(h2, 0.0)                                   # (16, tc)
        y = jnp.dot(w3, h2, preferred_element_type=jnp.float32) + b3
        o_ref[:, pl.ds(off, tc)] = y.astype(o_ref.dtype)            # (4, tc) lane-dense store

    def body(i, carry):
        base = i * (step * tc)
        for u in range(step):                                       # static unroll
            do_chunk(base + u * tc)
        return carry

    lax.fori_loop(0, n_chunks // step, body, 0)


# ---------------------------------------------------------------------------
# Wrapper
# ---------------------------------------------------------------------------
def _round_up(n, m):
    return ((n + m - 1) // m) * m


_STEP_NS = 350.0                      # fixed per-grid-step pipeline overhead (~0.35 us)
_HBM_NS_PER_ELEM = 32.0 / 1400.0      # 32 B/element @ ~1.4 TB/s HBM


def _choose_tile(b128, max_tile):
    """Pick a lane-tile (multiple of 128) balancing per-step overhead, HBM
    traffic and padding waste; mildly prefer even grids for v7x megacore."""
    max_tile = max(128, max_tile)
    n = b128 // 128

    cands = set()
    for d in range(1, min(n, max_tile // 128) + 1):   # divisors -> zero extra padding
        if n % d == 0:
            cands.add(128 * d)
    t = 128
    while t <= max_tile:                              # power-of-two fallbacks
        cands.add(t)
        t *= 2

    def cost(t):
        b_pad = _round_up(b128, t)
        steps = b_pad // t
        c = steps * _STEP_NS + b_pad * _HBM_NS_PER_ELEM
        if steps > 1 and steps % 2:                   # mild even-grid preference (v7x)
            c += 0.5 * _STEP_NS
        return c

    tb = min(sorted(cands), key=cost)

    # Large batch that still fits in one step: split in two so v7x's second
    # TensorCore gets work (one extra step costs less than the halved stream).
    if _round_up(b128, tb) // tb == 1 and n % 2 == 0 and b128 >= 32768:
        tb = b128 // 2
    return tb


def predator_net_forward(x, params, *, max_tile=65536):
    """x: (B, 4) float32.  params: w{i}: (out, in), b{i}: (out, 1).  Returns (B, 4)."""
    B = x.shape[0]
    w1, b1 = params["w1"], params["b1"]
    w2, b2 = params["w2"], params["b2"]
    w3, b3 = params["w3"], params["b3"]

    b128 = _round_up(B, 128)
    tb = _choose_tile(b128, max_tile)
    b_pad = _round_up(b128, tb)
    grid = (b_pad // tb,)

    # Batch-on-lanes layout; pad lanes only when needed (<=127 columns typical).
    xt = x.T.astype(jnp.float32)
    if b_pad != B:
        xt = jnp.pad(xt, ((0, 0), (0, b_pad - B)))

    # Weights/biases: full-array blocks with constant index maps -> DMA'd once,
    # resident in VMEM across all grid steps.
    const = lambda a: pl.BlockSpec(a.shape, lambda i: (0,) * a.ndim)

    param_bytes = sum(int(np.prod(p.shape)) * 4 for p in (w1, b1, w2, b2, w3, b3))
    cost = pl.CostEstimate(
        flops=2 * (4 * 32 + 32 * 16 + 16 * 4) * b_pad,
        transcendentals=0,
        bytes_accessed=(16 + 16) * b_pad + param_bytes,
    )

    out_t = pl.pallas_call(
        predator_mlp_kernel,
        out_shape=jax.ShapeDtypeStruct((4, b_pad), jnp.float32),
        grid=grid,
        in_specs=[
            pl.BlockSpec((4, tb), lambda i: (0, i)),   # x^T: stream large batch tiles
            const(w1), const(b1),
            const(w2), const(b2),
            const(w3), const(b3),
        ],
        out_specs=pl.BlockSpec((4, tb), lambda i: (0, i)),
        compiler_params=pltpu.CompilerParams(
            dimension_semantics=("parallel",),          # v7x: shard batch over both TCs
        ),
        cost_estimate=cost,
    )(xt, w1, b1, w2, b2, w3, b3)

    return out_t[:, :B].T


# ---------------------------------------------------------------------------
# Init / reference / test
# ---------------------------------------------------------------------------
def init_params(key):
    """Deterministic init mimicking nn.Linear default (uniform +/- 1/sqrt(fan_in)).
    Weights stored (out, in) like PyTorch; biases (out, 1) for lane broadcast."""
    dims = [(4, 32), (32, 16), (16, 4)]
    params = {}
    for i, (fan_in, fan_out) in enumerate(dims, start=1):
        key, kw, kb = jax.random.split(key, 3)
        bound = 1.0 / np.sqrt(fan_in)
        params[f"w{i}"] = jax.random.uniform(
            kw, (fan_out, fan_in), jnp.float32, -bound, bound)
        params[f"b{i}"] = jax.random.uniform(
            kb, (fan_out, 1), jnp.float32, -bound, bound)
    return params


def reference_forward(x, params):
    h1 = jnp.maximum(x @ params["w1"].T + params["b1"].T, 0.0)
    h2 = jnp.maximum(h1 @ params["w2"].T + params["b2"].T, 0.0)
    return h2 @ params["w3"].T + params["b3"].T


if __name__ == "__main__":
    key = jax.random.PRNGKey(0)
    key, kx, kx2 = jax.random.split(key, 3)
    params = init_params(key)

    # Small batch (single tile, padded to 128 lanes).
    batch = 8
    x = jax.random.normal(kx, (batch, 4), jnp.float32)
    out = jax.block_until_ready(predator_net_forward(x, params))
    ref = reference_forward(x, params)
    np.testing.assert_allclose(np.asarray(out), np.asarray(ref), rtol=1e-5, atol=1e-5)

    # Multi-tile path (forces grid > 1 with padding) to exercise the pipeline.
    x2 = jax.random.normal(kx2, (300, 4), jnp.float32)
    out2 = jax.block_until_ready(predator_net_forward(x2, params, max_tile=128))
    ref2 = reference_forward(x2, params)
    np.testing.assert_allclose(np.asarray(out2), np.asarray(ref2), rtol=1e-4, atol=1e-4)

    print("KERNEL_OK")
</pallas_src>

<mosaic_0001>
module attributes {stable_mosaic.version = 11 : i64} {
  func.func @predator_mlp_kernel(%arg0: i32, %arg1: memref<4x128xf32, #tpu.memory_space<vmem>>, %arg2: memref<32x4xf32, #tpu.memory_space<vmem>>, %arg3: memref<32x1xf32, #tpu.memory_space<vmem>>, %arg4: memref<16x32xf32, #tpu.memory_space<vmem>>, %arg5: memref<16x1xf32, #tpu.memory_space<vmem>>, %arg6: memref<4x16xf32, #tpu.memory_space<vmem>>, %arg7: memref<4x1xf32, #tpu.memory_space<vmem>>, %arg8: memref<4x128xf32, #tpu.memory_space<vmem>>) attributes {dimension_semantics = [#tpu.dimension_semantics<parallel>], iteration_bounds = array<i64: 1>, scalar_prefetch = 0 : i64, scratch_operands = 0 : i64, tpu.core_type = #tpu.core_type<tc>, window_params = [{transform_indices = @transform_0, window_bounds = array<i64: 4, 128>}, {pipeline_mode = #tpu.pipeline_mode<synchronous>, transform_indices = @transform_1, window_bounds = array<i64: 32, 4>}, {pipeline_mode = #tpu.pipeline_mode<synchronous>, transform_indices = @transform_2, window_bounds = array<i64: 32, 1>}, {pipeline_mode = #tpu.pipeline_mode<synchronous>, transform_indices = @transform_3, window_bounds = array<i64: 16, 32>}, {pipeline_mode = #tpu.pipeline_mode<synchronous>, transform_indices = @transform_4, window_bounds = array<i64: 16, 1>}, {pipeline_mode = #tpu.pipeline_mode<synchronous>, transform_indices = @transform_5, window_bounds = array<i64: 4, 16>}, {pipeline_mode = #tpu.pipeline_mode<synchronous>, transform_indices = @transform_6, window_bounds = array<i64: 4, 1>}, {transform_indices = @transform_7, window_bounds = array<i64: 4, 128>}]} {
    %c0 = arith.constant 0 : index
    %c0_0 = arith.constant 0 : index
    %0 = vector.load %arg2[%c0, %c0_0] : memref<32x4xf32, #tpu.memory_space<vmem>>, vector<32x4xf32>
    %c0_1 = arith.constant 0 : index
    %c0_2 = arith.constant 0 : index
    %1 = vector.load %arg3[%c0_1, %c0_2] : memref<32x1xf32, #tpu.memory_space<vmem>>, vector<32x1xf32>
    %c0_3 = arith.constant 0 : index
    %c0_4 = arith.constant 0 : index
    %2 = vector.load %arg4[%c0_3, %c0_4] : memref<16x32xf32, #tpu.memory_space<vmem>>, vector<16x32xf32>
    %c0_5 = arith.constant 0 : index
    %c0_6 = arith.constant 0 : index
    %3 = vector.load %arg5[%c0_5, %c0_6] : memref<16x1xf32, #tpu.memory_space<vmem>>, vector<16x1xf32>
    %c0_7 = arith.constant 0 : index
    %c0_8 = arith.constant 0 : index
    %4 = vector.load %arg6[%c0_7, %c0_8] : memref<4x16xf32, #tpu.memory_space<vmem>>, vector<4x16xf32>
    %c0_9 = arith.constant 0 : index
    %c0_10 = arith.constant 0 : index
    %5 = vector.load %arg7[%c0_9, %c0_10] : memref<4x1xf32, #tpu.memory_space<vmem>>, vector<4x1xf32>
    %c0_i32 = arith.constant 0 : i32
    %c128_i32 = arith.constant 128 : i32
    %6 = arith.muli %c0_i32, %c128_i32 : i32
    %c0_i32_11 = arith.constant 0 : i32
    %7 = arith.addi %6, %c0_i32_11 : i32
    %8 = tpu.assume_multiple %7, 128 : i32
    %c0_12 = arith.constant 0 : index
    %9 = arith.index_cast %8 : i32 to index
    %10 = vector.load %arg1[%c0_12, %9] : memref<4x128xf32, #tpu.memory_space<vmem>>, vector<4x128xf32>
    %cst = arith.constant dense<0.000000e+00> : vector<32x128xf32>
    %11 = tpu.matmul %0, %10, %cst {dimension_numbers = #tpu.dot_dimension_numbers<[1], [0], [0], [1], [0, 0, 1, 1], [], []>} : vector<32x4xf32>, vector<4x128xf32>, vector<32x128xf32> -> vector<32x128xf32>
    %12 = vector.broadcast %1 : vector<32x1xf32> to vector<32x128xf32>
    %13 = arith.addf %11, %12 : vector<32x128xf32>
    %cst_13 = arith.constant 0.000000e+00 : f32
    %14 = vector.broadcast %cst_13 : f32 to vector<32x128xf32>
    %15 = arith.maximumf %13, %14 : vector<32x128xf32>
    %cst_14 = arith.constant dense<0.000000e+00> : vector<16x128xf32>
    %16 = tpu.matmul %2, %15, %cst_14 {dimension_numbers = #tpu.dot_dimension_numbers<[1], [0], [0], [1], [0, 0, 1, 1], [], []>} : vector<16x32xf32>, vector<32x128xf32>, vector<16x128xf32> -> vector<16x128xf32>
    %17 = vector.broadcast %3 : vector<16x1xf32> to vector<16x128xf32>
    %18 = arith.addf %16, %17 : vector<16x128xf32>
    %cst_15 = arith.constant 0.000000e+00 : f32
    %19 = vector.broadcast %cst_15 : f32 to vector<16x128xf32>
    %20 = arith.maximumf %18, %19 : vector<16x128xf32>
    %cst_16 = arith.constant dense<0.000000e+00> : vector<4x128xf32>
    %21 = tpu.matmul %4, %20, %cst_16 {dimension_numbers = #tpu.dot_dimension_numbers<[1], [0], [0], [1], [0, 0, 1, 1], [], []>} : vector<4x16xf32>, vector<16x128xf32>, vector<4x128xf32> -> vector<4x128xf32>
    %22 = vector.broadcast %5 : vector<4x1xf32> to vector<4x128xf32>
    %23 = arith.addf %21, %22 : vector<4x128xf32>
    %c0_17 = arith.constant 0 : index
    %24 = arith.index_cast %8 : i32 to index
    %25 = vector.load %arg8[%c0_17, %24] : memref<4x128xf32, #tpu.memory_space<vmem>>, vector<4x128xf32>
    tpu.vector_store %arg8[%c0_17, %24], %23 {strides = array<i32>} : memref<4x128xf32, #tpu.memory_space<vmem>>, vector<4x128xf32>,
    %c1_i32 = arith.constant 1 : i32
    return
  }
  func.func @transform_0(%arg0: i32) -> (i32, i32) {
    %c0_i32 = arith.constant 0 : i32
    %c0_i32_0 = arith.constant 0 : i32
    return %c0_i32, %arg0 : i32, i32
  }
  func.func @transform_1(%arg0: i32) -> (i32, i32) {
    %c0_i32 = arith.constant 0 : i32
    %c0_i32_0 = arith.constant 0 : i32
    %c0_i32_1 = arith.constant 0 : i32
    return %c0_i32, %c0_i32_0 : i32, i32
  }
  func.func @transform_2(%arg0: i32) -> (i32, i32) {
    %c0_i32 = arith.constant 0 : i32
    %c0_i32_0 = arith.constant 0 : i32
    %c0_i32_1 = arith.constant 0 : i32
    return %c0_i32, %c0_i32_0 : i32, i32
  }
  func.func @transform_3(%arg0: i32) -> (i32, i32) {
    %c0_i32 = arith.constant 0 : i32
    %c0_i32_0 = arith.constant 0 : i32
    %c0_i32_1 = arith.constant 0 : i32
    return %c0_i32, %c0_i32_0 : i32, i32
  }
  func.func @transform_4(%arg0: i32) -> (i32, i32) {
    %c0_i32 = arith.constant 0 : i32
    %c0_i32_0 = arith.constant 0 : i32
    %c0_i32_1 = arith.constant 0 : i32
    return %c0_i32, %c0_i32_0 : i32, i32
  }
  func.func @transform_5(%arg0: i32) -> (i32, i32) {
    %c0_i32 = arith.constant 0 : i32
    %c0_i32_0 = arith.constant 0 : i32
    %c0_i32_1 = arith.constant 0 : i32
    return %c0_i32, %c0_i32_0 : i32, i32
  }
  func.func @transform_6(%arg0: i32) -> (i32, i32) {
    %c0_i32 = arith.constant 0 : i32
    %c0_i32_0 = arith.constant 0 : i32
    %c0_i32_1 = arith.constant 0 : i32
    return %c0_i32, %c0_i32_0 : i32, i32
  }
  func.func @transform_7(%arg0: i32) -> (i32, i32) {
    %c0_i32 = arith.constant 0 : i32
    %c0_i32_0 = arith.constant 0 : i32
    return %c0_i32, %arg0 : i32, i32
  }
}

</mosaic_0001>

<bundles_post_ra>
// kernel: tpu_custom_call.1
= control target key start
LH: loop header
LB: loop body
LE: loop exit
PB: predicated region body
PF: predicated region fallthrough
CT: control target
= control target key end

     0   :  { %vm75_vm0 = vcmask 1043456   ;;  %vm62_vm1 = vcmask 31744   ;;  %v446_v5 = vmov 0   ;;  %s554_s0 = inlined_call_operand.vmem [shape: f32[4,128], index: 0, kind: input, shape index: {}]   ;;  %s555_s1 = inlined_call_operand.vmem [shape: f32[32,4], index: 1, kind: input, shape index: {}]   ;;  %s556_s2 = inlined_call_operand.vmem [shape: f32[32,1], index: 2, kind: input, shape index: {}]   ;;  %s557_s3 = inlined_call_operand.vmem [shape: f32[16,32], index: 3, kind: input, shape index: {}]   ;;  %s558_s4 = inlined_call_operand.vmem [shape: f32[16,1], index: 4, kind: input, shape index: {}]   ;;  %s559_s5 = inlined_call_operand.vmem [shape: f32[4,16], index: 5, kind: input, shape index: {}]   ;;  %s560_s6 = inlined_call_operand.vmem [shape: f32[4,1], index: 6, kind: input, shape index: {}]   ;;  %s561_s7 = inlined_call_operand.hbm [shape: f32[4,128], index: 7, kind: output, shape index: {}]  }
   0x1   :  { %v41_v0 = vld [vmem:[%s554_s0] sm:$0xf]  ;;  %v28_v2 = vld [vmem:[%s555_s1 + $0x8] sm:$0xff]  ;;  %v29_v3 = vld [vmem:[%s555_s1 + $0x10] sm:$0xff]  ;;  %420 = vset.pattern.permute.xlu0 %v446_v5  ;;  %421 = vset.pattern.permute.xlu1 %v446_v5 }
   0x2   :  { %v27_v1 = vld [vmem:[%s555_s1] sm:$0xff]  ;;  %378 = vmatprep.subr.msk.mxu0 %vm75_vm0, %v41_v0  ;;  %v33_v6 = vld [vmem:[%s556_s2 + $0x10] sm:$0xff]  ;;  %v30_v7 = vld [vmem:[%s555_s1 + $0x18] sm:$0xff] }
   0x3   :  { %380 = vmatprep.mubr.msk.f32.mxu0 %vm62_vm1, %v27_v1  ;;  %v31_v4 = vld [vmem:[%s556_s2] sm:$0xff]  ;;  %379 = vmatpush3.msk.msra.mxu0 %vm75_vm0, %v41_v0  ;;  %v32_v8 = vld [vmem:[%s556_s2 + $0x8] sm:$0xff] }
   0x4   :  { %381 = vmatmul.mubr.msk.f32.vlgmr.msra.gmra.mrb[0].mxu0 %vm62_vm1, %v28_v2  ;;  %44 = vperm.xlu0 %420, %v31_v4  }
   0x5   :  { %383 = vmatprep.mubr.msk.f32.mxu0 %vm62_vm1, %v29_v3 }
   0x6   :  { %12 = vsyncpa [#allocation3], 0  ;;  %54 = vperm.xlu1 %421, %v33_v6   ;;  %v34_v9 = vld [vmem:[%s556_s2 + $0x18] sm:$0xff]  ;;  %v37_v10 = vld [vmem:[%s558_s4] sm:$0xff]  ;;  %vm178_vm2 = vcmask 261120   ;;  %v447_v33 = vmov 0.0|0.0  }
   0x7   :  { %v38_v11 = vld [vmem:[%s558_s4 + $0x8] sm:$0xff]  ;;  %v40_v12 = vld [vmem:[%s560_s6] sm:$0xf]  ;;  %412 = vmatprep.subr.bf16.mxu0 %v447_v33  ;;  %vm448_vm3 = vmmov 0   ;;  %v449_v34 = vmov 0.0   ;;  %vm267_vm4 = vcmask 130048  }
   0x8   :  { %384 = vmatmul.mubr.msk.f32.gmra.mrb[2].mxu0 %vm62_vm1, %v30_v7  ;;  %49 = vperm.xlu0 %420, %v32_v8   ;;  %v35_v13 = vld [vmem:[%s557_s3] sm:$0xff]  ;;  %v36_v32 = vld [vmem:[%s557_s3 + $0x8] sm:$0xff]  ;;  %s450_s3 = smov [#allocation2]  }
   0x9   :  { %394 = vmatprep.mubr.msk.f32.mxu1 %vm178_vm2, %v35_v13  ;;  %401 = vmatprep.mubr.msk.f32.mxu0 %vm448_vm3, %v449_v34  ;;  %v39_v44 = vld [vmem:[%s559_s5] sm:$0xf]  ;;  %s348_s26 = sshll.u32 %s450_s3, 4  ;;  %s349_s26 = int_to_ptr.vmem [resolvable:$true] %s348_s26 }
   0xa   :  { %59 = vperm.xlu1 %421, %v34_v9   ;;  %s422_s27 = scalar_lea.vmem %s349_s26, 64  ;;  %p427_p1 = scmp.lt.s32.totalorder %s349_s26, %s349_s26 }
   0xb   :  { %p423_p0 = scmp.ne.s32.totalorder %s349_s26, %s422_s27  ;;  %p428_p2 = scmp.lt.s32.totalorder %s422_s27, %s422_s27 }
   0xc   :  { %170 = vperm.xlu0 %420, %v37_v10  }
   0xd   :  { %p429_p3 = por %p428_p2, %p427_p1 }
   0xe   :  { %175 = vperm.xlu1 %421, %v38_v11  }
   0xf   :  { %p430_p4 = pnand %p429_p3, %p423_p0 }
  0x10   :  { %264 = vperm.xlu0 %420, %v40_v12  }
  0x83   :  { %v45_v14 = vpop.permute.xlu0 %44 }
  0x85   :  { %v55_v15 = vpop.permute.xlu1 %54 }
  0x87   :  { %v50_v16 = vpop.permute.xlu0 %49 }
  0x89   :  { %v60_v22 = vpop.permute.xlu1 %59 }
  0x8b   :  { %v171_v37 = vpop.permute.xlu0 %170 }
  0x8d   :  { %v176_v35 = vpop.permute.xlu1 %175 }
  0x8f   :  { %v265_v45 = vpop.permute.xlu0 %264 }
  0xd7   :  { %v382_v17 = vpop.f32.mrb[0].mxu0 }
  0xd8   :  { %v151_v18 = vadd.f32 %v382_v17, %v50_v16  ;;  %v145_v19 = vpop.f32.mrb[1].mxu0 }
  0xd9   :  { %v146_v20 = vadd.f32 %v145_v19, %v45_v14 }
  0xda   :  { %v165_v21 = vmax.f32 %v151_v18, 0.0 }
  0xdb   :  { %v164_v23 = vmax.f32 %v146_v20, 0.0  ;;  %v385_v24 = vpop.f32.mrb[2].mxu0 }
  0xdc   :  { %v161_v25 = vadd.f32 %v385_v24, %v60_v22  ;;  %v155_v26 = vpop.f32.mrb[3].mxu0 }
  0xdd   :  { %v156_v27 = vadd.f32 %v155_v26, %v55_v15  ;;  %v404_v28 = vpack.c.bf16 %v165_v21, %v164_v23 }
  0xde   :  { %v167_v29 = vmax.f32 %v161_v25, 0.0 }
  0xdf   :  { %v166_v30 = vmax.f32 %v156_v27, 0.0  ;;  %405 = vmatprep.subr.bf16.mxu1 %v404_v28 }
  0xe0   :  { %407 = vmatpush3.bf16.msra.mxu1 %v404_v28 }
  0xe1   :  { %v408_v31 = vpack.c.bf16 %v167_v29, %v166_v30 }
  0xe3   :  { %409 = vmatprep.subr.bf16.mxu1 %v408_v31 }
  0xe4   :  { %411 = vmatpush3.bf16.msra.mxu1 %v408_v31 }
  0xe7   :  { %395 = vmatmul.mubr.msk.f32.vlgmr.msra.gmra.mrb[0].mxu1 %vm178_vm2, %v36_v32 }
 0x1ba   :  { %v396_v36 = vpop.f32.mrb[0].mxu1 }
 0x1bb   :  { %v257_v38 = vadd.f32 %v396_v36, %v176_v35  ;;  %v251_v39 = vpop.f32.mrb[1].mxu1 }
 0x1bc   :  { %v252_v40 = vadd.f32 %v251_v39, %v171_v37 }
 0x1bd   :  { %v261_v41 = vmax.f32 %v257_v38, 0.0 }
 0x1be   :  { %v260_v42 = vmax.f32 %v252_v40, 0.0 }
 0x1c0   :  { %v413_v43 = vpack.c.bf16 %v261_v41, %v260_v42 }
 0x1c2   :  { %414 = vmatpush3.bf16.msra.mxu0 %v413_v43 }
 0x1c5   :  { %402 = vmatmul.mubr.msk.f32.vlgmr.msra.gmra.mrb[4].mxu0 %vm267_vm4, %v39_v44 }
 0x298   :  { %v337_v46 = vpop.f32.mrb[4].mxu0 }
 0x299   :  { %v338_v47 = vadd.f32 %v337_v46, %v265_v45  ;;  %v403_v48 = vpop.f32.mrb[5].mxu0 }
 0x29b   :  { %341 = vst [vmem:[#allocation2] sm:$0xf] %v338_v47 }
 0x29c   :  { %433 = shalt.err (!%p430_p4)
}
 0x29d   :  { %s434_s5 = scalar_lea.hbm %s561_s7, 64 }
 0x29e   :  { %p435_p5 = scmp.ne.s32.totalorder %s561_s7, %s434_s5  ;;  %p438_p6 = scmp.lt.u32.totalorder %s434_s5, %s561_s7 }
 0x2a0   :  { %p440_p7 = pnand %p438_p6, %p435_p5 }
 0x2a2   :  { %443 = shalt.err (!%p440_p7)
}
 0x2a3   :  { %351 = dma.vmem_to_hbm [thread:$0]  %s349_s26, 64, %s561_s7, [#allocation3]  }
 0x2a4   :  { %444 = dma.done.wait [#allocation3], 64  }
 0x2a5   :  { %445 = vsyncadd [#allocation3], 4294967232 }
 0x2a6   :  { %355 = vsyncpa [#allocation3], 1 }

</bundles_post_ra>
